<compile_context>
chip_gen: v6e
topology: v6e:2x2x1
jax: 0.10.0
libtpu: 0.0.40
codegen_flags: <defaults>
</compile_context>

<pallas_src>
import functools

import jax
import jax.numpy as jnp
from jax.experimental import pallas as pl
from jax.experimental.pallas import tpu as pltpu


# ----------------------------- Pallas kernel ------------------------------- #

def _dense_conv_kernel(*args, cs, lrelu, res0_scale, extra_scales, up2):
    """Fused multi-source 3x3 conv + bias (+LeakyReLU) (+residual chain).

    ref order: bodies[n_src], halos[n_src], w, bias, extras..., out, xpad, zbuf
      body_i : (TH_src, W, C_i)   source i tile (TH_src = TH//2 when up2)
      halo_i : (2, W, C_i)        row above / row below the tile (zeros at edges)
      w      : (9*sum(C), Cout)   taps k=3*dy+dx major, concat-channel minor, bf16
      bias   : (1, Cout)          f32
      out    : (TH, W, Cout)
      xpad   : (TH+2, W+2, sum(C))  zero-padded, channel-concatenated tile (VMEM)
      zbuf   : (TH*W, 9*sum(C))     im2col slab (VMEM) -> single MXU matmul
    """
    n_src = len(cs)
    n_extra = len(extra_scales)
    assert len(args) == 2 * n_src + n_extra + 5
    bodies = args[:n_src]
    halos = args[n_src:2 * n_src]
    w_ref = args[2 * n_src]
    b_ref = args[2 * n_src + 1]
    extras = args[2 * n_src + 2:2 * n_src + 2 + n_extra]
    o_ref = args[2 * n_src + 2 + n_extra]
    xpad = args[2 * n_src + 3 + n_extra]
    zbuf = args[2 * n_src + 4 + n_extra]

    TH, W, Cout = o_ref.shape
    ctot = sum(cs)

    # Zero the left/right padding columns; top/bottom rows come from the halos.
    zcol = jnp.zeros((TH + 2, 1, ctot), xpad.dtype)
    xpad[:, 0:1, :] = zcol
    xpad[:, W + 1:W + 2, :] = zcol

    # Assemble the channel-concatenated, zero-padded input tile in VMEM.
    off = 0
    for i in range(n_src):
        C = cs[i]
        halo = halos[i]
        xpad[0:1, 1:W + 1, off:off + C] = halo[0:1, :, :]
        xpad[TH + 1:TH + 2, 1:W + 1, off:off + C] = halo[1:2, :, :]
        bb = bodies[i][:, :, :]
        if up2:
            # Nearest-neighbour 2x replication along H, done in VMEM (fused
            # upsample): each LR row is written to two consecutive HR rows.
            th_src = bb.shape[0]
            bb = jnp.broadcast_to(bb[:, None], (th_src, 2, W, C)).reshape(TH, W, C)
        xpad[1:TH + 1, 1:W + 1, off:off + C] = bb
        off += C

    # im2col: 9 taps, full concatenated channel width each -> one big-K matmul.
    for k in range(9):
        dy, dx = divmod(k, 3)
        zbuf[:, k * ctot:(k + 1) * ctot] = (
            xpad[dy:dy + TH, dx:dx + W, :].reshape(TH * W, ctot))

    acc = jnp.dot(zbuf[:, :], w_ref[:, :], preferred_element_type=jnp.float32)
    acc = acc + b_ref[:, :].astype(jnp.float32)
    if lrelu:
        acc = jnp.where(acc >= 0.0, acc, 0.2 * acc)
    if res0_scale is not None:      # out = out*scale + sources[0]   (RDB residual)
        acc = (acc * res0_scale
               + bodies[0][:, :, :].reshape(TH * W, Cout).astype(jnp.float32))
    for r_ref, s in zip(extras, extra_scales):   # RRDB residual / fea+trunk
        acc = acc * s + r_ref[:, :, :].reshape(TH * W, Cout).astype(jnp.float32)

    o_ref[:, :, :] = acc.reshape(TH, W, Cout).astype(o_ref.dtype)


# ------------------------------ tiling helpers ------------------------------ #

def _device_vmem_budget():
    """(tile budget bytes, vmem_limit_bytes or None) per TPU generation."""
    kind = ""
    try:
        kind = jax.devices()[0].device_kind.lower()
    except Exception:
        pass
    if ("v7" in kind) or ("7x" in kind):
        return 40 << 20, 48 << 20            # v7x: 64 MiB physical VMEM
    if ("v2" in kind) or ("v3" in kind):
        return 10 << 20, None                # old chips: 16 MiB, keep defaults
    return 88 << 20, 100 << 20               # v4/v5e/v5p/v6e: 128 MiB physical


def _pick_tile_h(B, H_src, W, ctot, cout, n_extra, up2, act_bytes, out_bytes,
                 budget):
    """Largest divisor of H_src whose per-step VMEM footprint fits the budget,
    keeping at least 2 grid steps so both v7x TensorCores (and the pipeline)
    have work."""
    lane = lambda c: -(-c // 128) * 128

    def fits(th):
        tho = (2 * th) if up2 else th
        bodies = 2 * th * W * ctot * act_bytes              # double-buffered
        halos = 2 * 2 * W * ctot * act_bytes
        wgt = 2 * 9 * ctot * cout * act_bytes
        extras = 2 * n_extra * tho * W * cout * act_bytes
        outb = 2 * tho * W * cout * out_bytes
        xpadb = (tho + 2) * (W + 2) * lane(ctot) * act_bytes
        zbufb = tho * W * lane(9 * ctot) * act_bytes
        f32tmp = 3 * tho * W * cout * 4                     # dot result + epilogue
        return bodies + halos + wgt + extras + outb + xpadb + zbufb + f32tmp <= budget

    best = 1
    for th in range(1, H_src + 1):
        if H_src % th == 0 and fits(th):
            best = th
    if B * (H_src // best) < 2:              # guarantee >= 2 grid steps if possible
        for th in range(best - 1, 0, -1):
            if H_src % th == 0:
                best = th
                break
    return best


def _make_halo(x, th):
    """(B, nH, 2, W, C): row above / below each H-tile (zeros at image edges)."""
    B, H, W, C = x.shape
    z = jnp.zeros((B, 1, W, C), x.dtype)
    above = jnp.concatenate([z, x[:, th - 1:H - 1:th]], axis=1)   # row i*th - 1
    below = jnp.concatenate([x[:, th::th], z], axis=1)            # row (i+1)*th
    return jnp.stack([above, below], axis=2)


# ------------------------------ conv wrapper -------------------------------- #

def dense_conv(srcs, halos, w_packed, b_packed, *, tile_h, lrelu=False,
               res0_scale=None, extra_res=(), up2=False, out_dtype=None,
               vmem_limit=None):
    """3x3 "same" conv over channel-concatenated `srcs`, fused epilogue.

    srcs:     list of (B, H_src, W, C_i) activations (bf16); conv input is their
              channel concatenation (concat is never materialized).
    halos:    matching list of precomputed _make_halo(src, tile_h) tensors.
    w_packed: (9*sum(C_i), Cout) bf16 packed weight (tap-major, channel-minor).
    b_packed: (1, Cout) f32 bias.
    up2:      sources are low-res along H; the kernel replicates rows 2x
              (nearest) while building the tile -> output height is 2*H_src.
              (W replication must already be done on the source.)
    res0_scale: out = out*res0_scale + srcs[0]   (requires C_0 == Cout).
    extra_res:  tuple of (array(B,H_out,W,Cout), scale): out = out*scale + array.
    """
    B, H_src, W, _ = srcs[0].shape
    cs = tuple(int(s.shape[-1]) for s in srcs)
    ctot = sum(cs)
    K, cout = w_packed.shape
    assert K == 9 * ctot, (K, ctot)
    assert H_src % tile_h == 0, (H_src, tile_h)
    if res0_scale is not None:
        assert cs[0] == cout
    if up2:
        assert res0_scale is None and not extra_res

    nH = H_src // tile_h
    TH = 2 * tile_h if up2 else tile_h
    H_out = 2 * H_src if up2 else H_src
    act_dt = srcs[0].dtype
    out_dtype = act_dt if out_dtype is None else out_dtype

    extra_arrs = [r for (r, _) in extra_res]
    extra_scales = tuple(float(s) for (_, s) in extra_res)

    def body_spec(c, th):
        return pl.BlockSpec((None, th, W, c), lambda bb, ii: (bb, ii, 0, 0))

    def halo_spec(c):
        return pl.BlockSpec((None, None, 2, W, c), lambda bb, ii: (bb, ii, 0, 0, 0))

    in_specs = ([body_spec(c, tile_h) for c in cs]
                + [halo_spec(c) for c in cs]
                + [pl.BlockSpec((K, cout), lambda bb, ii: (0, 0)),     # resident
                   pl.BlockSpec((1, cout), lambda bb, ii: (0, 0))]
                + [body_spec(cout, TH) for _ in extra_arrs])
    out_spec = pl.BlockSpec((None, TH, W, cout), lambda bb, ii: (bb, ii, 0, 0))

    kernel = functools.partial(_dense_conv_kernel, cs=cs, lrelu=lrelu,
                               res0_scale=res0_scale, extra_scales=extra_scales,
                               up2=up2)
    cp = dict(dimension_semantics=("parallel", "parallel"))
    if vmem_limit is not None:
        cp["vmem_limit_bytes"] = int(vmem_limit)

    return pl.pallas_call(
        kernel,
        grid=(B, nH),
        in_specs=in_specs,
        out_specs=out_spec,
        out_shape=jax.ShapeDtypeStruct((B, H_out, W, cout), out_dtype),
        scratch_shapes=[pltpu.VMEM((TH + 2, W + 2, ctot), act_dt),
                        pltpu.VMEM((TH * W, 9 * ctot), act_dt)],
        compiler_params=pltpu.CompilerParams(**cp),
    )(*srcs, *halos, w_packed, b_packed, *extra_arrs)


# ------------------------------ parameters ---------------------------------- #

def init_conv(key, cin, cout, w_scale=0.05):
    kw, kb = jax.random.split(key)
    w = jax.random.normal(kw, (3, 3, cin, cout), jnp.float32) * w_scale
    b = jax.random.normal(kb, (cout,), jnp.float32) * 0.01
    return {"w": w, "b": b}


def init_rdb(key, nf, gc):
    ks = jax.random.split(key, 5)
    return {
        "c1": init_conv(ks[0], nf, gc),
        "c2": init_conv(ks[1], nf + gc, gc),
        "c3": init_conv(ks[2], nf + 2 * gc, gc),
        "c4": init_conv(ks[3], nf + 3 * gc, gc),
        "c5": init_conv(ks[4], nf + 4 * gc, nf),
    }


def init_rrdb(key, nf, gc):
    k1, k2, k3 = jax.random.split(key, 3)
    return {"rdb1": init_rdb(k1, nf, gc),
            "rdb2": init_rdb(k2, nf, gc),
            "rdb3": init_rdb(k3, nf, gc)}


def init_rrdbnet(key, in_nc, out_nc, nf, nb, gc):
    keys = jax.random.split(key, nb + 6)
    return {
        "conv_first": init_conv(keys[0], in_nc, nf),
        "trunk": [init_rrdb(keys[1 + i], nf, gc) for i in range(nb)],
        "trunk_conv": init_conv(keys[nb + 1], nf, nf),
        "upconv1": init_conv(keys[nb + 2], nf, nf),
        "upconv2": init_conv(keys[nb + 3], nf, nf),
        "HRconv": init_conv(keys[nb + 4], nf, nf),
        "conv_last": init_conv(keys[nb + 5], nf, out_nc),
    }


def pack_conv(p, act_dtype):
    """(3,3,Cin,Cout) f32 -> (9*Cin, Cout) bf16 (tap-major, channel-minor),
    bias -> (1, Cout) f32. Done once at parameter-prep time."""
    kh, kw, cin, cout = p["w"].shape
    return {"w": p["w"].reshape(kh * kw * cin, cout).astype(act_dtype),
            "b": p["b"].reshape(1, cout).astype(jnp.float32)}


def pack_params(params, act_dtype=jnp.bfloat16):
    pk = lambda p: pack_conv(p, act_dtype)
    pk_rdb = lambda r: {k: pk(v) for k, v in r.items()}
    pk_rrdb = lambda r: {k: pk_rdb(v) for k, v in r.items()}
    return {
        "conv_first": pk(params["conv_first"]),
        "trunk": [pk_rrdb(b) for b in params["trunk"]],
        "trunk_conv": pk(params["trunk_conv"]),
        "upconv1": pk(params["upconv1"]),
        "upconv2": pk(params["upconv2"]),
        "HRconv": pk(params["HRconv"]),
        "conv_last": pk(params["conv_last"]),
    }


# ------------------------------ model forward -------------------------------- #

def rdb_forward(p, x, x_h, th, vlimit, rrdb_res=None):
    """ResidualDenseBlock_5C; concat + 0.2 residual fused into the conv kernels.
    Halos are built once per activation and reused by every consumer."""
    x1 = dense_conv([x], [x_h], p["c1"]["w"], p["c1"]["b"], tile_h=th,
                    lrelu=True, vmem_limit=vlimit)
    x1_h = _make_halo(x1, th)
    x2 = dense_conv([x, x1], [x_h, x1_h], p["c2"]["w"], p["c2"]["b"], tile_h=th,
                    lrelu=True, vmem_limit=vlimit)
    x2_h = _make_halo(x2, th)
    x3 = dense_conv([x, x1, x2], [x_h, x1_h, x2_h], p["c3"]["w"], p["c3"]["b"],
                    tile_h=th, lrelu=True, vmem_limit=vlimit)
    x3_h = _make_halo(x3, th)
    x4 = dense_conv([x, x1, x2, x3], [x_h, x1_h, x2_h, x3_h],
                    p["c4"]["w"], p["c4"]["b"], tile_h=th, lrelu=True,
                    vmem_limit=vlimit)
    x4_h = _make_halo(x4, th)
    extra = () if rrdb_res is None else ((rrdb_res, 0.2),)
    return dense_conv([x, x1, x2, x3, x4], [x_h, x1_h, x2_h, x3_h, x4_h],
                      p["c5"]["w"], p["c5"]["b"], tile_h=th, res0_scale=0.2,
                      extra_res=extra, vmem_limit=vlimit)


def rrdb_forward(p, x, x_h, th, vlimit):
    out = rdb_forward(p["rdb1"], x, x_h, th, vlimit)
    out_h = _make_halo(out, th)
    out = rdb_forward(p["rdb2"], out, out_h, th, vlimit)
    out_h = _make_halo(out, th)
    # out*0.2 + x fused into RDB3's conv5 epilogue.
    return rdb_forward(p["rdb3"], out, out_h, th, vlimit, rrdb_res=x)


def rrdbnet_forward(packed, x_nchw, act_dtype=jnp.bfloat16):
    # NCHW -> NHWC, bf16 activations (f32 accumulation inside the kernels).
    x = jnp.transpose(x_nchw, (0, 2, 3, 1)).astype(act_dtype)
    B, H, W, _ = x.shape
    nf = packed["conv_first"]["b"].shape[-1]
    gc = (packed["trunk"][0]["rdb1"]["c1"]["b"].shape[-1]
          if packed["trunk"] else 0)
    budget, vlimit = _device_vmem_budget()
    ab = jnp.dtype(act_dtype).itemsize

    # ---- LR trunk stage: one tile height shared so halos are reusable ----
    ctot_lr = nf + 4 * gc
    th_lr = _pick_tile_h(B, H, W, ctot_lr, nf, 1, False, ab, ab, budget)
    x_h = _make_halo(x, th_lr)
    fea = dense_conv([x], [x_h], packed["conv_first"]["w"],
                     packed["conv_first"]["b"], tile_h=th_lr, vmem_limit=vlimit)
    t, t_h = fea, _make_halo(fea, th_lr)
    for blk in packed["trunk"]:
        t = rrdb_forward(blk, t, t_h, th_lr, vlimit)
        t_h = _make_halo(t, th_lr)
    # trunk_conv with "fea = fea + trunk" fused into its epilogue.
    fea = dense_conv([t], [t_h], packed["trunk_conv"]["w"],
                     packed["trunk_conv"]["b"], tile_h=th_lr,
                     extra_res=((fea, 1.0),), vmem_limit=vlimit)

    # ---- upsample stage 1: H replication fused in-kernel (up2=True) ----
    # TODO(synk): fuse the W replication too; for now it is a single XLA repeat
    # on the LR-height tensor (half the traffic of a full 2x2 repeat).
    fea_w = jnp.repeat(fea, 2, axis=2)                      # (B, H, 2W, nf)
    th_u1 = _pick_tile_h(B, H, 2 * W, nf, nf, 0, True, ab, ab, budget)
    fea = dense_conv([fea_w], [_make_halo(fea_w, th_u1)],
                     packed["upconv1"]["w"], packed["upconv1"]["b"],
                     tile_h=th_u1, lrelu=True, up2=True, vmem_limit=vlimit)

    # ---- upsample stage 2 ----
    fea_w = jnp.repeat(fea, 2, axis=2)                      # (B, 2H, 4W, nf)
    th_u2 = _pick_tile_h(B, 2 * H, 4 * W, nf, nf, 0, True, ab, ab, budget)
    fea = dense_conv([fea_w], [_make_halo(fea_w, th_u2)],
                     packed["upconv2"]["w"], packed["upconv2"]["b"],
                     tile_h=th_u2, lrelu=True, up2=True, vmem_limit=vlimit)

    # ---- HR stage ----
    th_hr = _pick_tile_h(B, 4 * H, 4 * W, nf, nf, 0, False, ab, 4, budget)
    fea_h = _make_halo(fea, th_hr)
    hr = dense_conv([fea], [fea_h], packed["HRconv"]["w"], packed["HRconv"]["b"],
                    tile_h=th_hr, lrelu=True, vmem_limit=vlimit)
    hr_h = _make_halo(hr, th_hr)
    out = dense_conv([hr], [hr_h], packed["conv_last"]["w"],
                     packed["conv_last"]["b"], tile_h=th_hr,
                     out_dtype=jnp.float32, vmem_limit=vlimit)
    return jnp.transpose(out, (0, 3, 1, 2))    # back to NCHW, f32


# ------------------------------ self checks --------------------------------- #

def _ref_conv(srcs, w33, b, lrelu=False, res0_scale=None, extra_res=(), up2=False):
    """XLA reference for one fused conv (same bf16-quantized weights)."""
    x = jnp.concatenate([s.astype(jnp.float32) for s in srcs], axis=-1)
    if up2:
        x = jnp.repeat(x, 2, axis=1)
    wq = w33.astype(jnp.bfloat16).astype(jnp.float32)
    y = jax.lax.conv_general_dilated(
        x, wq, (1, 1), "SAME", dimension_numbers=("NHWC", "HWIO", "NHWC"),
        precision=jax.lax.Precision.HIGHEST)
    y = y + b.reshape(1, 1, 1, -1).astype(jnp.float32)
    if lrelu:
        y = jnp.where(y >= 0, y, 0.2 * y)
    if res0_scale is not None:
        y = y * res0_scale + srcs[0].astype(jnp.float32)
    for rr, s_ in extra_res:
        y = y * s_ + rr.astype(jnp.float32)
    return y


def _check_dense_conv(key):
    ks = jax.random.split(key, 8)
    # 1) dense-block style conv: 2 sources, multi-tile halos, fused epilogue.
    B, H, W = 1, 6, 8
    s0 = jax.random.normal(ks[0], (B, H, W, 16)).astype(jnp.bfloat16)
    s1 = jax.random.normal(ks[1], (B, H, W, 8)).astype(jnp.bfloat16)
    r = jax.random.normal(ks[2], (B, H, W, 16)).astype(jnp.bfloat16)
    w = jax.random.normal(ks[3], (3, 3, 24, 16)) * 0.05
    b = jax.random.normal(ks[4], (16,)) * 0.01
    pc = pack_conv({"w": w, "b": b}, jnp.bfloat16)
    th = 2
    y = dense_conv([s0, s1], [_make_halo(s0, th), _make_halo(s1, th)],
                   pc["w"], pc["b"], tile_h=th, lrelu=True, res0_scale=0.2,
                   extra_res=((r, 0.2),), out_dtype=jnp.float32)
    yr = _ref_conv([s0, s1], w, b, lrelu=True, res0_scale=0.2,
                   extra_res=((r, 0.2),))
    err = float(jnp.max(jnp.abs(y - yr)))
    assert err < 5e-3, f"dense conv check failed: max abs err {err}"

    # 2) fused nearest-2x (H) upsample conv, multi-tile.
    s = jax.random.normal(ks[5], (B, 4, 8, 16)).astype(jnp.bfloat16)
    w2 = jax.random.normal(ks[6], (3, 3, 16, 16)) * 0.05
    b2 = jax.random.normal(ks[7], (16,)) * 0.01
    pc2 = pack_conv({"w": w2, "b": b2}, jnp.bfloat16)
    y2 = dense_conv([s], [_make_halo(s, 2)], pc2["w"], pc2["b"], tile_h=2,
                    lrelu=True, up2=True, out_dtype=jnp.float32)
    yr2 = _ref_conv([s], w2, b2, lrelu=True, up2=True)
    err2 = float(jnp.max(jnp.abs(y2 - yr2)))
    assert err2 < 5e-3, f"up2 conv check failed: max abs err {err2}"


# --------------------------------- main ------------------------------------- #

if __name__ == "__main__":
    key = jax.random.PRNGKey(0)
    kx, kp, kc = jax.random.split(key, 3)

    # Small correctness checks of the fused conv kernel against an XLA conv
    # (exercises multi-tile halos, the fused epilogue and the up2 path).
    _check_dense_conv(kc)

    # Small config consistent with the module structure.
    in_nc, out_nc, nf, nb, gc = 3, 3, 16, 2, 8
    B, H, W = 2, 8, 8

    x = jax.random.normal(kx, (B, in_nc, H, W), jnp.float32)   # NCHW, like PyTorch
    params = init_rrdbnet(kp, in_nc, out_nc, nf, nb, gc)
    packed = pack_params(params, jnp.bfloat16)                 # pre-pack once

    fwd = jax.jit(rrdbnet_forward)
    out = jax.block_until_ready(fwd(packed, x))

    assert out.shape == (B, out_nc, 4 * H, 4 * W), out.shape   # two nearest-2x upsamples
    assert out.dtype == jnp.float32
    assert bool(jnp.all(jnp.isfinite(out)))
    print("KERNEL_OK")
</pallas_src>

<mosaic_0001>
module attributes {stable_mosaic.version = 11 : i64} {
  func.func @_dense_conv_kernel(%arg0: i32, %arg1: i32, %arg2: memref<1x2x8x16xbf16, #tpu.memory_space<vmem>>, %arg3: memref<1x2x8x8xbf16, #tpu.memory_space<vmem>>, %arg4: memref<1x1x2x8x16xbf16, #tpu.memory_space<vmem>>, %arg5: memref<1x1x2x8x8xbf16, #tpu.memory_space<vmem>>, %arg6: memref<216x16xbf16, #tpu.memory_space<vmem>>, %arg7: memref<1x16xf32, #tpu.memory_space<vmem>>, %arg8: memref<1x2x8x16xbf16, #tpu.memory_space<vmem>>, %arg9: memref<1x2x8x16xf32, #tpu.memory_space<vmem>>, %arg10: memref<4x10x24xbf16, #tpu.memory_space<vmem>>, %arg11: memref<16x216xbf16, #tpu.memory_space<vmem>>) attributes {dimension_semantics = [#tpu.dimension_semantics<parallel>, #tpu.dimension_semantics<parallel>], iteration_bounds = array<i64: 1, 3>, scalar_prefetch = 0 : i64, scratch_operands = 2 : i64, tpu.core_type = #tpu.core_type<tc>, window_params = [{transform_indices = @transform_0, window_bounds = array<i64: 1, 2, 8, 16>}, {transform_indices = @transform_1, window_bounds = array<i64: 1, 2, 8, 8>}, {transform_indices = @transform_2, window_bounds = array<i64: 1, 1, 2, 8, 16>}, {transform_indices = @transform_3, window_bounds = array<i64: 1, 1, 2, 8, 8>}, {pipeline_mode = #tpu.pipeline_mode<synchronous>, transform_indices = @transform_4, window_bounds = array<i64: 216, 16>}, {pipeline_mode = #tpu.pipeline_mode<synchronous>, transform_indices = @transform_5, window_bounds = array<i64: 1, 16>}, {transform_indices = @transform_6, window_bounds = array<i64: 1, 2, 8, 16>}, {transform_indices = @transform_7, window_bounds = array<i64: 1, 2, 8, 16>}]} {
    %cst = arith.constant 0.000000e+00 : bf16
    %0 = vector.broadcast %cst : bf16 to vector<4x1x24xbf16>
    %c0 = arith.constant 0 : index
    %c0_0 = arith.constant 0 : index
    %c0_1 = arith.constant 0 : index
    %1 = vector.load %arg10[%c0, %c0_0, %c0_1] : memref<4x10x24xbf16, #tpu.memory_space<vmem>>, vector<4x1x24xbf16>
    tpu.vector_store %arg10[%c0, %c0_0, %c0_1], %0 {strides = array<i32>} : memref<4x10x24xbf16, #tpu.memory_space<vmem>>, vector<4x1x24xbf16>,
    %c0_2 = arith.constant 0 : index
    %c9 = arith.constant 9 : index
    %c0_3 = arith.constant 0 : index
    %2 = vector.load %arg10[%c0_2, %c9, %c0_3] : memref<4x10x24xbf16, #tpu.memory_space<vmem>>, vector<4x1x24xbf16>
    tpu.vector_store %arg10[%c0_2, %c9, %c0_3], %0 {strides = array<i32>} : memref<4x10x24xbf16, #tpu.memory_space<vmem>>, vector<4x1x24xbf16>,
    %c0_4 = arith.constant 0 : index
    %c0_5 = arith.constant 0 : index
    %c0_6 = arith.constant 0 : index
    %c0_7 = arith.constant 0 : index
    %c0_8 = arith.constant 0 : index
    %3 = vector.load %arg4[%c0_4, %c0_5, %c0_6, %c0_7, %c0_8] : memref<1x1x2x8x16xbf16, #tpu.memory_space<vmem>>, vector<1x1x1x8x16xbf16>
    %4 = vector.shape_cast %3 : vector<1x1x1x8x16xbf16> to vector<1x8x16xbf16>
    %c0_9 = arith.constant 0 : index
    %c1 = arith.constant 1 : index
    %c0_10 = arith.constant 0 : index
    %5 = vector.load %arg10[%c0_9, %c1, %c0_10] : memref<4x10x24xbf16, #tpu.memory_space<vmem>>, vector<1x8x16xbf16>
    tpu.vector_store %arg10[%c0_9, %c1, %c0_10], %4 {strides = array<i32>} : memref<4x10x24xbf16, #tpu.memory_space<vmem>>, vector<1x8x16xbf16>,
    %c0_11 = arith.constant 0 : index
    %c0_12 = arith.constant 0 : index
    %c1_13 = arith.constant 1 : index
    %c0_14 = arith.constant 0 : index
    %c0_15 = arith.constant 0 : index
    %6 = vector.load %arg4[%c0_11, %c0_12, %c1_13, %c0_14, %c0_15] : memref<1x1x2x8x16xbf16, #tpu.memory_space<vmem>>, vector<1x1x1x8x16xbf16>
    %7 = vector.shape_cast %6 : vector<1x1x1x8x16xbf16> to vector<1x8x16xbf16>
    %c3 = arith.constant 3 : index
    %c1_16 = arith.constant 1 : index
    %c0_17 = arith.constant 0 : index
    %8 = vector.load %arg10[%c3, %c1_16, %c0_17] : memref<4x10x24xbf16, #tpu.memory_space<vmem>>, vector<1x8x16xbf16>
    tpu.vector_store %arg10[%c3, %c1_16, %c0_17], %7 {strides = array<i32>} : memref<4x10x24xbf16, #tpu.memory_space<vmem>>, vector<1x8x16xbf16>,
    %c0_18 = arith.constant 0 : index
    %c0_19 = arith.constant 0 : index
    %c0_20 = arith.constant 0 : index
    %c0_21 = arith.constant 0 : index
    %9 = vector.load %arg2[%c0_18, %c0_19, %c0_20, %c0_21] : memref<1x2x8x16xbf16, #tpu.memory_space<vmem>>, vector<1x2x8x16xbf16>
    %10 = vector.shape_cast %9 : vector<1x2x8x16xbf16> to vector<2x8x16xbf16>
    %c1_22 = arith.constant 1 : index
    %c1_23 = arith.constant 1 : index
    %c0_24 = arith.constant 0 : index
    %11 = vector.load %arg10[%c1_22, %c1_23, %c0_24] : memref<4x10x24xbf16, #tpu.memory_space<vmem>>, vector<2x8x16xbf16>
    tpu.vector_store %arg10[%c1_22, %c1_23, %c0_24], %10 {strides = array<i32>} : memref<4x10x24xbf16, #tpu.memory_space<vmem>>, vector<2x8x16xbf16>,
    %c0_25 = arith.constant 0 : index
    %c0_26 = arith.constant 0 : index
    %c0_27 = arith.constant 0 : index
    %c0_28 = arith.constant 0 : index
    %c0_29 = arith.constant 0 : index
    %12 = vector.load %arg5[%c0_25, %c0_26, %c0_27, %c0_28, %c0_29] : memref<1x1x2x8x8xbf16, #tpu.memory_space<vmem>>, vector<1x1x1x8x8xbf16>
    %13 = vector.shape_cast %12 : vector<1x1x1x8x8xbf16> to vector<1x8x8xbf16>
    %c0_30 = arith.constant 0 : index
    %c1_31 = arith.constant 1 : index
    %c16 = arith.constant 16 : index
    %14 = vector.load %arg10[%c0_30, %c1_31, %c16] : memref<4x10x24xbf16, #tpu.memory_space<vmem>>, vector<1x8x8xbf16>
    tpu.vector_store %arg10[%c0_30, %c1_31, %c16], %13 {strides = array<i32>} : memref<4x10x24xbf16, #tpu.memory_space<vmem>>, vector<1x8x8xbf16>,
    %c0_32 = arith.constant 0 : index
    %c0_33 = arith.constant 0 : index
    %c1_34 = arith.constant 1 : index
    %c0_35 = arith.constant 0 : index
    %c0_36 = arith.constant 0 : index
    %15 = vector.load %arg5[%c0_32, %c0_33, %c1_34, %c0_35, %c0_36] : memref<1x1x2x8x8xbf16, #tpu.memory_space<vmem>>, vector<1x1x1x8x8xbf16>
    %16 = vector.shape_cast %15 : vector<1x1x1x8x8xbf16> to vector<1x8x8xbf16>
    %c3_37 = arith.constant 3 : index
    %c1_38 = arith.constant 1 : index
    %c16_39 = arith.constant 16 : index
    %17 = vector.load %arg10[%c3_37, %c1_38, %c16_39] : memref<4x10x24xbf16, #tpu.memory_space<vmem>>, vector<1x8x8xbf16>
    tpu.vector_store %arg10[%c3_37, %c1_38, %c16_39], %16 {strides = array<i32>} : memref<4x10x24xbf16, #tpu.memory_space<vmem>>, vector<1x8x8xbf16>,
    %c0_40 = arith.constant 0 : index
    %c0_41 = arith.constant 0 : index
    %c0_42 = arith.constant 0 : index
    %c0_43 = arith.constant 0 : index
    %18 = vector.load %arg3[%c0_40, %c0_41, %c0_42, %c0_43] : memref<1x2x8x8xbf16, #tpu.memory_space<vmem>>, vector<1x2x8x8xbf16>
    %19 = vector.shape_cast %18 : vector<1x2x8x8xbf16> to vector<2x8x8xbf16>
    %c1_44 = arith.constant 1 : index
    %c1_45 = arith.constant 1 : index
    %c16_46 = arith.constant 16 : index
    %20 = vector.load %arg10[%c1_44, %c1_45, %c16_46] : memref<4x10x24xbf16, #tpu.memory_space<vmem>>, vector<2x8x8xbf16>
    tpu.vector_store %arg10[%c1_44, %c1_45, %c16_46], %19 {strides = array<i32>} : memref<4x10x24xbf16, #tpu.memory_space<vmem>>, vector<2x8x8xbf16>,
    %c0_47 = arith.constant 0 : index
    %c0_48 = arith.constant 0 : index
    %c0_49 = arith.constant 0 : index
    %21 = vector.load %arg10[%c0_47, %c0_48, %c0_49] : memref<4x10x24xbf16, #tpu.memory_space<vmem>>, vector<2x8x24xbf16>
    %22 = vector.shape_cast %21 : vector<2x8x24xbf16> to vector<16x24xbf16>
    %c0_50 = arith.constant 0 : index
    %c0_51 = arith.constant 0 : index
    %23 = vector.load %arg11[%c0_50, %c0_51] : memref<16x216xbf16, #tpu.memory_space<vmem>>, vector<16x24xbf16>
    tpu.vector_store %arg11[%c0_50, %c0_51], %22 {strides = array<i32>} : memref<16x216xbf16, #tpu.memory_space<vmem>>, vector<16x24xbf16>,
    %c0_52 = arith.constant 0 : index
    %c1_53 = arith.constant 1 : index
    %c0_54 = arith.constant 0 : index
    %24 = vector.load %arg10[%c0_52, %c1_53, %c0_54] : memref<4x10x24xbf16, #tpu.memory_space<vmem>>, vector<2x8x24xbf16>
    %25 = vector.shape_cast %24 : vector<2x8x24xbf16> to vector<16x24xbf16>
    %c0_55 = arith.constant 0 : index
    %c24 = arith.constant 24 : index
    %26 = vector.load %arg11[%c0_55, %c24] : memref<16x216xbf16, #tpu.memory_space<vmem>>, vector<16x24xbf16>
    tpu.vector_store %arg11[%c0_55, %c24], %25 {strides = array<i32>} : memref<16x216xbf16, #tpu.memory_space<vmem>>, vector<16x24xbf16>,
    %c0_56 = arith.constant 0 : index
    %c2 = arith.constant 2 : index
    %c0_57 = arith.constant 0 : index
    %27 = vector.load %arg10[%c0_56, %c2, %c0_57] : memref<4x10x24xbf16, #tpu.memory_space<vmem>>, vector<2x8x24xbf16>
    %28 = vector.shape_cast %27 : vector<2x8x24xbf16> to vector<16x24xbf16>
    %c0_58 = arith.constant 0 : index
    %c48 = arith.constant 48 : index
    %29 = vector.load %arg11[%c0_58, %c48] : memref<16x216xbf16, #tpu.memory_space<vmem>>, vector<16x24xbf16>
    tpu.vector_store %arg11[%c0_58, %c48], %28 {strides = array<i32>} : memref<16x216xbf16, #tpu.memory_space<vmem>>, vector<16x24xbf16>,
    %c1_59 = arith.constant 1 : index
    %c0_60 = arith.constant 0 : index
    %c0_61 = arith.constant 0 : index
    %30 = vector.load %arg10[%c1_59, %c0_60, %c0_61] : memref<4x10x24xbf16, #tpu.memory_space<vmem>>, vector<2x8x24xbf16>
    %31 = vector.shape_cast %30 : vector<2x8x24xbf16> to vector<16x24xbf16>
    %c0_62 = arith.constant 0 : index
    %c72 = arith.constant 72 : index
    %32 = vector.load %arg11[%c0_62, %c72] : memref<16x216xbf16, #tpu.memory_space<vmem>>, vector<16x24xbf16>
    tpu.vector_store %arg11[%c0_62, %c72], %31 {strides = array<i32>} : memref<16x216xbf16, #tpu.memory_space<vmem>>, vector<16x24xbf16>,
    %c1_63 = arith.constant 1 : index
    %c1_64 = arith.constant 1 : index
    %c0_65 = arith.constant 0 : index
    %33 = vector.load %arg10[%c1_63, %c1_64, %c0_65] : memref<4x10x24xbf16, #tpu.memory_space<vmem>>, vector<2x8x24xbf16>
    %34 = vector.shape_cast %33 : vector<2x8x24xbf16> to vector<16x24xbf16>
    %c0_66 = arith.constant 0 : index
    %c96 = arith.constant 96 : index
    %35 = vector.load %arg11[%c0_66, %c96] : memref<16x216xbf16, #tpu.memory_space<vmem>>, vector<16x24xbf16>
    tpu.vector_store %arg11[%c0_66, %c96], %34 {strides = array<i32>} : memref<16x216xbf16, #tpu.memory_space<vmem>>, vector<16x24xbf16>,
    %c1_67 = arith.constant 1 : index
    %c2_68 = arith.constant 2 : index
    %c0_69 = arith.constant 0 : index
    %36 = vector.load %arg10[%c1_67, %c2_68, %c0_69] : memref<4x10x24xbf16, #tpu.memory_space<vmem>>, vector<2x8x24xbf16>
    %37 = vector.shape_cast %36 : vector<2x8x24xbf16> to vector<16x24xbf16>
    %c0_70 = arith.constant 0 : index
    %c120 = arith.constant 120 : index
    %38 = vector.load %arg11[%c0_70, %c120] : memref<16x216xbf16, #tpu.memory_space<vmem>>, vector<16x24xbf16>
    tpu.vector_store %arg11[%c0_70, %c120], %37 {strides = array<i32>} : memref<16x216xbf16, #tpu.memory_space<vmem>>, vector<16x24xbf16>,
    %c2_71 = arith.constant 2 : index
    %c0_72 = arith.constant 0 : index
    %c0_73 = arith.constant 0 : index
    %39 = vector.load %arg10[%c2_71, %c0_72, %c0_73] : memref<4x10x24xbf16, #tpu.memory_space<vmem>>, vector<2x8x24xbf16>
    %40 = vector.shape_cast %39 : vector<2x8x24xbf16> to vector<16x24xbf16>
    %c0_74 = arith.constant 0 : index
    %c144 = arith.constant 144 : index
    %41 = vector.load %arg11[%c0_74, %c144] : memref<16x216xbf16, #tpu.memory_space<vmem>>, vector<16x24xbf16>
    tpu.vector_store %arg11[%c0_74, %c144], %40 {strides = array<i32>} : memref<16x216xbf16, #tpu.memory_space<vmem>>, vector<16x24xbf16>,
    %c2_75 = arith.constant 2 : index
    %c1_76 = arith.constant 1 : index
    %c0_77 = arith.constant 0 : index
    %42 = vector.load %arg10[%c2_75, %c1_76, %c0_77] : memref<4x10x24xbf16, #tpu.memory_space<vmem>>, vector<2x8x24xbf16>
    %43 = vector.shape_cast %42 : vector<2x8x24xbf16> to vector<16x24xbf16>
    %c0_78 = arith.constant 0 : index
    %c168 = arith.constant 168 : index
    %44 = vector.load %arg11[%c0_78, %c168] : memref<16x216xbf16, #tpu.memory_space<vmem>>, vector<16x24xbf16>
    tpu.vector_store %arg11[%c0_78, %c168], %43 {strides = array<i32>} : memref<16x216xbf16, #tpu.memory_space<vmem>>, vector<16x24xbf16>,
    %c2_79 = arith.constant 2 : index
    %c2_80 = arith.constant 2 : index
    %c0_81 = arith.constant 0 : index
    %45 = vector.load %arg10[%c2_79, %c2_80, %c0_81] : memref<4x10x24xbf16, #tpu.memory_space<vmem>>, vector<2x8x24xbf16>
    %46 = vector.shape_cast %45 : vector<2x8x24xbf16> to vector<16x24xbf16>
    %c0_82 = arith.constant 0 : index
    %c192 = arith.constant 192 : index
    %47 = vector.load %arg11[%c0_82, %c192] : memref<16x216xbf16, #tpu.memory_space<vmem>>, vector<16x24xbf16>
    tpu.vector_store %arg11[%c0_82, %c192], %46 {strides = array<i32>} : memref<16x216xbf16, #tpu.memory_space<vmem>>, vector<16x24xbf16>,
    %c0_83 = arith.constant 0 : index
    %c0_84 = arith.constant 0 : index
    %48 = vector.load %arg11[%c0_83, %c0_84] : memref<16x216xbf16, #tpu.memory_space<vmem>>, vector<16x216xbf16>
    %c0_85 = arith.constant 0 : index
    %c0_86 = arith.constant 0 : index
    %49 = vector.load %arg6[%c0_85, %c0_86] : memref<216x16xbf16, #tpu.memory_space<vmem>>, vector<216x16xbf16>
    %cst_87 = arith.constant dense<0.000000e+00> : vector<16x16xf32>
    %50 = tpu.matmul %48, %49, %cst_87 {dimension_numbers = #tpu.dot_dimension_numbers<[1], [0], [0], [1], [0, 0, 1, 1], [], []>} : vector<16x216xbf16>, vector<216x16xbf16>, vector<16x16xf32> -> vector<16x16xf32>
    %c0_88 = arith.constant 0 : index
    %c0_89 = arith.constant 0 : index
    %51 = vector.load %arg7[%c0_88, %c0_89] : memref<1x16xf32, #tpu.memory_space<vmem>>, vector<1x16xf32>
    %52 = vector.broadcast %51 : vector<1x16xf32> to vector<16x16xf32>
    %53 = arith.addf %50, %52 : vector<16x16xf32>
    %cst_90 = arith.constant 0.000000e+00 : f32
    %54 = vector.broadcast %cst_90 : f32 to vector<16x16xf32>
    %55 = arith.cmpf oge, %53, %54 : vector<16x16xf32>
    %cst_91 = arith.constant 2.000000e-01 : f32
    %56 = vector.broadcast %cst_91 : f32 to vector<16x16xf32>
    %57 = arith.mulf %56, %53 : vector<16x16xf32>
    %58 = arith.select %55, %53, %57 : vector<16x16xi1>, vector<16x16xf32>
    %cst_92 = arith.constant 2.000000e-01 : f32
    %59 = vector.broadcast %cst_92 : f32 to vector<16x16xf32>
    %60 = arith.mulf %58, %59 : vector<16x16xf32>
    %c0_93 = arith.constant 0 : index
    %c0_94 = arith.constant 0 : index
    %c0_95 = arith.constant 0 : index
    %c0_96 = arith.constant 0 : index
    %61 = vector.load %arg2[%c0_93, %c0_94, %c0_95, %c0_96] : memref<1x2x8x16xbf16, #tpu.memory_space<vmem>>, vector<1x2x8x16xbf16>
    %62 = vector.shape_cast %61 : vector<1x2x8x16xbf16> to vector<2x8x16xbf16>
    %63 = vector.shape_cast %62 : vector<2x8x16xbf16> to vector<16x16xbf16>
    %64 = arith.extf %63 : vector<16x16xbf16> to vector<16x16xf32>
    %65 = arith.addf %60, %64 : vector<16x16xf32>
    %cst_97 = arith.constant 2.000000e-01 : f32
    %66 = vector.broadcast %cst_97 : f32 to vector<16x16xf32>
    %67 = arith.mulf %65, %66 : vector<16x16xf32>
    %c0_98 = arith.constant 0 : index
    %c0_99 = arith.constant 0 : index
    %c0_100 = arith.constant 0 : index
    %c0_101 = arith.constant 0 : index
    %68 = vector.load %arg8[%c0_98, %c0_99, %c0_100, %c0_101] : memref<1x2x8x16xbf16, #tpu.memory_space<vmem>>, vector<1x2x8x16xbf16>
    %69 = vector.shape_cast %68 : vector<1x2x8x16xbf16> to vector<2x8x16xbf16>
    %70 = vector.shape_cast %69 : vector<2x8x16xbf16> to vector<16x16xbf16>
    %71 = arith.extf %70 : vector<16x16xbf16> to vector<16x16xf32>
    %72 = arith.addf %67, %71 : vector<16x16xf32>
    %73 = vector.shape_cast %72 : vector<16x16xf32> to vector<2x8x16xf32>
    %c0_102 = arith.constant 0 : index
    %c0_103 = arith.constant 0 : index
    %c0_104 = arith.constant 0 : index
    %c0_105 = arith.constant 0 : index
    %74 = vector.load %arg9[%c0_102, %c0_103, %c0_104, %c0_105] : memref<1x2x8x16xf32, #tpu.memory_space<vmem>>, vector<1x2x8x16xf32>
    %75 = vector.shape_cast %74 : vector<1x2x8x16xf32> to vector<2x8x16xf32>
    %76 = vector.shape_cast %73 : vector<2x8x16xf32> to vector<1x2x8x16xf32>
    tpu.vector_store %arg9[%c0_102, %c0_103, %c0_104, %c0_105], %76 {strides = array<i32>} : memref<1x2x8x16xf32, #tpu.memory_space<vmem>>, vector<1x2x8x16xf32>,
    return
  }
  func.func @transform_0(%arg0: i32, %arg1: i32) -> (i32, i32, i32, i32) {
    %c0_i32 = arith.constant 0 : i32
    %c0_i32_0 = arith.constant 0 : i32
    %c0_i32_1 = arith.constant 0 : i32
    return %arg0, %arg1, %c0_i32, %c0_i32_0 : i32, i32, i32, i32
  }
  func.func @transform_1(%arg0: i32, %arg1: i32) -> (i32, i32, i32, i32) {
    %c0_i32 = arith.constant 0 : i32
    %c0_i32_0 = arith.constant 0 : i32
    %c0_i32_1 = arith.constant 0 : i32
    return %arg0, %arg1, %c0_i32, %c0_i32_0 : i32, i32, i32, i32
  }
  func.func @transform_2(%arg0: i32, %arg1: i32) -> (i32, i32, i32, i32, i32) {
    %c0_i32 = arith.constant 0 : i32
    %c0_i32_0 = arith.constant 0 : i32
    %c0_i32_1 = arith.constant 0 : i32
    %c0_i32_2 = arith.constant 0 : i32
    return %arg0, %arg1, %c0_i32, %c0_i32_0, %c0_i32_1 : i32, i32, i32, i32, i32
  }
  func.func @transform_3(%arg0: i32, %arg1: i32) -> (i32, i32, i32, i32, i32) {
    %c0_i32 = arith.constant 0 : i32
    %c0_i32_0 = arith.constant 0 : i32
    %c0_i32_1 = arith.constant 0 : i32
    %c0_i32_2 = arith.constant 0 : i32
    return %arg0, %arg1, %c0_i32, %c0_i32_0, %c0_i32_1 : i32, i32, i32, i32, i32
  }
  func.func @transform_4(%arg0: i32, %arg1: i32) -> (i32, i32) {
    %c0_i32 = arith.constant 0 : i32
    %c0_i32_0 = arith.constant 0 : i32
    %c0_i32_1 = arith.constant 0 : i32
    return %c0_i32, %c0_i32_0 : i32, i32
  }
  func.func @transform_5(%arg0: i32, %arg1: i32) -> (i32, i32) {
    %c0_i32 = arith.constant 0 : i32
    %c0_i32_0 = arith.constant 0 : i32
    %c0_i32_1 = arith.constant 0 : i32
    return %c0_i32, %c0_i32_0 : i32, i32
  }
  func.func @transform_6(%arg0: i32, %arg1: i32) -> (i32, i32, i32, i32) {
    %c0_i32 = arith.constant 0 : i32
    %c0_i32_0 = arith.constant 0 : i32
    %c0_i32_1 = arith.constant 0 : i32
    return %arg0, %arg1, %c0_i32, %c0_i32_0 : i32, i32, i32, i32
  }
  func.func @transform_7(%arg0: i32, %arg1: i32) -> (i32, i32, i32, i32) {
    %c0_i32 = arith.constant 0 : i32
    %c0_i32_0 = arith.constant 0 : i32
    %c0_i32_1 = arith.constant 0 : i32
    return %arg0, %arg1, %c0_i32, %c0_i32_0 : i32, i32, i32, i32
  }
}

</mosaic_0001>

<bundles_post_ra>
// kernel: tpu_custom_call.1
= control target key start
LH: loop header
LB: loop body
LE: loop exit
PB: predicated region body
PF: predicated region fallthrough
CT: control target
= control target key end

     0   :  { %12 = vsyncpa [#allocation5], 0  ;;  %s1888_s0 = inlined_call_operand.vmem [shape: bf16[1,6,8,16], index: 0, kind: input, shape index: {}]   ;;  %s1889_s1 = inlined_call_operand.vmem [shape: bf16[1,6,8,8], index: 1, kind: input, shape index: {}]   ;;  %s1890_s2 = inlined_call_operand.vmem [shape: bf16[1,3,2,8,16], index: 2, kind: input, shape index: {}]   ;;  %s1891_s3 = inlined_call_operand.vmem [shape: bf16[1,3,2,8,8], index: 3, kind: input, shape index: {}]   ;;  %s1892_s4 = inlined_call_operand.vmem [shape: bf16[216,16], index: 4, kind: input, shape index: {}]   ;;  %s1893_s5 = inlined_call_operand.vmem [shape: f32[1,16], index: 5, kind: input, shape index: {}]   ;;  %s1894_s6 = inlined_call_operand.vmem [shape: bf16[1,6,8,16], index: 6, kind: input, shape index: {}]   ;;  %s1895_s7 = inlined_call_operand.hbm [shape: f32[1,6,8,16], index: 7, kind: output, shape index: {}]  }
   0x1   :  { %14 = vsyncpa [#allocation5 + $0x1], 0  ;;  %s1529_s24 = smov 0   ;;  %s1531_s25 = smov 0  }
   0x2   :  { %s1533_s26 = smov 0   ;;  %s1535_s27 = smov 0  }
   0x3   :  { %s1537_s28 = smov 0   ;;  %s1539_s29 = smov 0  }
   0x4 LB: > { %s1258_s30 = sadd.s32 4294967295, %s1475_s29   ;;  %s1259_s8 = sadd.s32 4294967294, %s1475_s29   ;;  %s1475_s29 = sphi %s1539_s29, %s20_s29   ;;  %s1471_s28 = sphi %s1537_s28, %s1921_s28   ;;  %s1467_s27 = sphi %s1535_s27, %s1920_s27   ;;  %s1463_s26 = sphi %s1533_s26, %s1919_s26   ;;  %s1459_s25 = sphi %s1531_s25, %s1918_s25   ;;  %s1455_s24 = sphi %s1529_s24, %s1917_s24  }
   0x5   : > { %s29_s9 = sadd.s32 1, %s1471_s28  ;;  %s223_s10 = sadd.s32 1, %s1463_s26 }
   0x6   : > { %p30_p0 = scmp.ge.s32.totalorder %s29_s9, 3  ;;  %p233_p1 = scmp.ne.s32.totalorder %s1463_s26, %s1459_s25 }
   0x7   : > { %p234_p2 = scmp.eq.s32.totalorder %s1258_s30, 2  ;;  %p239_p3 = scmp.ne.s32.totalorder %s1459_s25, %s1455_s24 }
   0x8   : > { %s1923_s9 = smov (%p30_p0, %s29_s9), 0  ;;  %p240_p5 = scmp.eq.s32.totalorder %s1259_s8, 2 }
   0x9   : > { %p1569_p4 = por %p234_p2, %p233_p1  ;;  %s219_s12 = ssub.s32 %s1471_s28, %s1923_s9 }
   0xa   : > { %p1262_p6 = scmp.ge.s32.totalorder %s1475_s29, 1  ;;  %p221_p7 = scmp.eq.s32.totalorder %s219_s12, 0 }
   0xb   : > { %p1576_p8 = por %p240_p5, %p239_p3  ;;  %p327_p9 = scmp.lt.s32.totalorder %s1475_s29, 4 }
   0xc   : > { %s1582_s14 = scalar_select %p221_p7, %s1463_s26, %s223_s10  }
   0xd   : > { %p328_p10 = pnand %p1262_p6, %p327_p9 }
   0xe   : > { %p421_p11 = scmp.lt.s32.totalorder (!%p328_p10), %s1467_s27, 2  ;;  %s1264_s15 = sshll.u32 (!%p328_p10), %s1467_s27, 1 }
   0xf   : > { %331 = sbr.rel (%p328_p10) target bundleno = 544 (0x220), region = 48  ;;  %p1599_p12 = scmp.lt.s32.totalorder (!%p328_p10), %s1264_s15, 5 }
  0x10   : > { %s1477_s19 = smov (!%p328_p10), 16   ;;  %s1479_s22 = smov (!%p328_p10), 72  }
  0x11   : > { %s1482_s20 = smov (!%p328_p10), 24  }
  0x14   : > { %vm449_vm0 = vcmask 188416   ;;  %vm450_vm1 = vsmask.f32 256  ;;  %v452_v1 = vld [vmem:[#allocation2] sm:$0x1]  ;;  %s422_s16 = scalar_select %p421_p11, %s1467_s27, 2 }
  0x15   : > { %vm1588_vm2 = vmand %vm449_vm0, %vm450_vm1  ;;  %v455_v2 = vld [vmem:[#allocation2 + $0x8] sm:$0x1]  ;;  %v458_v5 = vld [vmem:[#allocation2 + $0x10] sm:$0x1]  ;;  %vm494_vm3 = vcmask 122880   ;;  %s1925_s15 = smov (!%p1599_p12, %s1264_s15), 5 }
  0x16   : > { %v453_v3 = vsel %vm1588_vm2, 0, %v452_v1  ;;  %v456_v4 = vsel %vm1588_vm2, 0, %v455_v2  ;;  %v459_v6 = vsel %vm1588_vm2, 0, %v458_v5  ;;  %v461_v7 = vld [vmem:[#allocation2 + $0x18] sm:$0x1]  ;;  %s1305_s18 = sshll.u32 %s422_s16, 3  ;;  %vm1645_vm7 = vmand %vm494_vm3, %vm450_vm1 }
  0x17   : > { %454 = vst [vmem:[#allocation2] sm:$0x1] %v453_v3  ;;  %457 = vst [vmem:[#allocation2 + $0x8] sm:$0x1] %v456_v4  ;;  %vm464_vm4 = vsmask.f32 7938  ;;  %s436_s21 = scalar_lea.vmem %s1891_s3, %s1305_s18  ;;  %s427_s30 = scalar_lea.vmem %s1890_s2, %s1305_s18 }
  0x18   : > { %460 = vst [vmem:[#allocation2 + $0x10] sm:$0x1] %v459_v6  ;;  %v462_v8 = vsel %vm1588_vm2, 0, %v461_v7  ;;  %vm1609_vm5 = vmand %vm449_vm0, %vm464_vm4  ;;  %v466_v10 = vld [vmem:[#allocation2 + $0x4] sm:$0x1]  ;;  %s1631_s8 = sshll.u32 %s1925_s15, 2 }
  0x19   : > { %v469_v11 = vld [vmem:[#allocation2 + $0xc] sm:$0x1]  ;;  %463 = vst [vmem:[#allocation2 + $0x18] sm:$0x1] %v462_v8  ;;  %v467_v12 = vsel %vm1609_vm5, 0, %v466_v10  ;;  %vm489_vm6 = vcmask 125952   ;;  %s417_s16 = scalar_lea.vmem %s1889_s1, %s1631_s8  ;;  %s1641_s18 = scalar_lea.vmem %s1888_s0, %s1631_s8 }
  0x1a   : > { %v470_v13 = vsel %vm1609_vm5, 0, %v469_v11  ;;  %v472_v14 = vld [vmem:[#allocation2 + $0x14] sm:$0x1]  ;;  %v475_v15 = vld [vmem:[#allocation2 + $0x1c] sm:$0x1]  ;;  %vm1652_vm8 = vmand %vm489_vm6, %vm464_vm4  ;;  %vm573_vm9 = vcmask 188544  }
  0x1b   : > { %v553_v16 = vld [vmem:[%s436_s21] sm:$0xf]  ;;  %v1274_v18 = vld [vmem:[%s427_s30 + $0x4] sm:$0xf]  ;;  %468 = vst [vmem:[#allocation2 + $0x4] sm:$0x1] %v467_v12  ;;  %vm1695_vm11 = vmand %vm573_vm9, %vm450_vm1 }
  0x1c   : > { %v478_v17 = vld [vmem:[%s427_s30] sm:$0xf]  ;;  %471 = vst [vmem:[#allocation2 + $0xc] sm:$0x1] %v470_v13  ;;  %v555_v19 = vshrl.u32 %v553_v16, 16  ;;  %v502_v22 = vshrl.u32 %v1274_v18, 16 }
  0x1d   : > { %v480_v20 = vshrl.u32 %v478_v17, 16  ;;  %v483_v21 = vshll.u32 %v478_v17, 16  ;;  %v505_v23 = vshll.u32 %v1274_v18, 16  ;;  %v558_v24 = vshll.u32 %v553_v16, 16  ;;  %v1275_v25 = vld [vmem:[%s436_s21 + $0x4] sm:$0xf] }
  0x1e   : > { %v473_v26 = vsel %vm1609_vm5, 0, %v472_v14  ;;  %v476_v27 = vsel %vm1609_vm5, 0, %v475_v15  ;;  %v557_v28 = vrot.slane %v555_v19, 7  ;;  %v504_v30 = vrot.slane %v502_v22, 7  ;;  %v491_v33 = vld [vmem:[#allocation2] sm:$0xf] }
  0x1f   : > { %v482_v29 = vrot.slane %v480_v20, 7  ;;  %474 = vst [vmem:[#allocation2 + $0x14] sm:$0x1] %v473_v26  ;;  %477 = vst [vmem:[#allocation2 + $0x1c] sm:$0x1] %v476_v27  ;;  %v581_v31 = vshrl.u32 %v1275_v25, 16 }
  0x20   : > { %v584_v32 = vshll.u32 %v1275_v25, 16  ;;  %v561_v34 = vrot.slane %v557_v28, 4  ;;  %v507_v37 = vor.u32 %v505_v23, %v504_v30  ;;  %v601_v38 = vld [vmem:[%s417_s16 + $0x4] sm:$0xf]  ;;  %v600_v39 = vld [vmem:[%s417_s16] sm:$0xf]  ;;  %v560_v42 = vor.u32 %v558_v24, %v557_v28 }
  0x21   : > { %v485_v35 = vor.u32 %v483_v21, %v482_v29  ;;  %v486_v36 = vrot.slane %v482_v29, 4  ;;  %v508_v41 = vrot.slane %v504_v30, 4  ;;  %v611_v43 = vshrl.u32 %v601_v38, 16  ;;  %v518_v45 = vld [vmem:[%s1641_s18] sm:$0xf]  ;;  %v1382_v20 = vld [vmem:[%s1892_s4 + $0x38] sm:$0xff]  }
  0x22   : > { %v614_v44 = vshll.u32 %v601_v38, 16  ;;  %564 = vrot.lane.b32.xlu1 %v561_v34, %s1477_s19  ;;  %v519_v47 = vld [vmem:[%s1641_s18 + $0x4] sm:$0xf]  ;;  %v521_v48 = vshrl.u32 %v518_v45, 16  ;;  %v524_v49 = vshll.u32 %v518_v45, 16  ;;  %v603_v50 = vshrl.u32 %v600_v39, 16  ;;  %562 = vrot.lane.b32.xlu0 %v560_v42, %s1477_s19 }
  0x23   : > { %v606_v51 = vshll.u32 %v600_v39, 16  ;;  %v613_v52 = vrot.slane %v611_v43, 7  ;;  %v529_v53 = vshrl.u32 %v519_v47, 16  ;;  %v532_v54 = vshll.u32 %v519_v47, 16  ;;  %v496_v56 = vld [vmem:[#allocation2 + $0x4] sm:$0x1] }
  0x24   : > { %v583_v55 = vrot.slane %v581_v31, 7  ;;  %v523_v57 = vrot.slane %v521_v48, 7  ;;  %v605_v58 = vrot.slane %v603_v50, 7  ;;  %v544_v59 = vld [vmem:[#allocation2 + $0xc] sm:$0x1]  ;;  %v497_v60 = vsel %vm1645_vm7, %v486_v36, %v496_v56  ;;  %v1383_v22 = vld [vmem:[%s1892_s4 + $0x30] sm:$0xff]  }
  0x25   : > { %v492_v61 = vsel %vm1652_vm8, %v485_v35, %v491_v33  ;;  %v541_v62 = vld [vmem:[#allocation2 + $0x8] sm:$0xf]  ;;  %v616_v63 = vor.u32 %v614_v44, %v613_v52  ;;  %v531_v0 = vrot.slane %v529_v53, 7  ;;  %498 = vst [vmem:[#allocation2 + $0x4] sm:$0x1] %v497_v60  ;;  %v617_v19 = vrot.slane %v613_v52, 4 }
  0x26   : > { %v515_v1 = vld [vmem:[#allocation2 + $0x1c] sm:$0x1]  ;;  %493 = vst [vmem:[#allocation2] sm:$0xf] %v492_v61  ;;  %v547_v2 = vld [vmem:[#allocation2 + $0x10] sm:$0xf]  ;;  %v526_v3 = vor.u32 %v524_v49, %v523_v57  ;;  %v608_v5 = vor.u32 %v606_v51, %v605_v58  ;;  %v586_v10 = vor.u32 %v584_v32, %v583_v55 }
  0x27   : > { %v527_v4 = vrot.slane %v523_v57, 4  ;;  %v550_v6 = vld [vmem:[#allocation2 + $0x14] sm:$0x1]  ;;  %v512_v7 = vld [vmem:[#allocation2 + $0x18] sm:$0xf]  ;;  %622 = vrot.lane.b32.xlu1 %v616_v63, %s1477_s19  ;;  %v534_v8 = vor.u32 %v532_v54, %v531_v0  ;;  %v535_v9 = vrot.slane %v531_v0, 4  ;;  %v516_v11 = vsel %vm1645_vm7, %v508_v41, %v515_v1 }
  0x28   : > { %618 = vrot.lane.b32.xlu0 %v608_v5, %s1477_s19  ;;  %v609_v12 = vrot.slane %v605_v58, 4  ;;  %517 = vst [vmem:[#allocation2 + $0x1c] sm:$0x1] %v516_v11  ;;  %v542_v14 = vsel %vm1652_vm8, %v526_v3, %v541_v62  ;;  %v513_v15 = vsel %vm1652_vm8, %v507_v37, %v512_v7  ;;  %v587_v18 = vrot.slane %v583_v55, 4  ;;  %v1384_v23 = vld [vmem:[%s1892_s4 + $0x28] sm:$0xff]   ;;  %v1385_v32 = vld [vmem:[%s1892_s4 + $0x20] sm:$0xff]  }
  0x29   : > { %v545_v13 = vsel %vm1645_vm7, %v527_v4, %v544_v59  ;;  %v551_v16 = vsel %vm1645_vm7, %v535_v9, %v550_v6  ;;  %v548_v17 = vsel %vm1652_vm8, %v534_v8, %v547_v2  ;;  %543 = vst [vmem:[#allocation2 + $0x8] sm:$0xf] %v542_v14  ;;  %514 = vst [vmem:[#allocation2 + $0x18] sm:$0xf] %v513_v15  ;;  %v1478_v21 = vmov 0   ;;  %v1386_v38 = vld [vmem:[%s1892_s4 + $0x18] sm:$0xff]  }
  0x2a   : > { %546 = vst [vmem:[#allocation2 + $0xc] sm:$0x1] %v545_v13  ;;  %552 = vst [vmem:[#allocation2 + $0x14] sm:$0x1] %v551_v16  ;;  %1019 = vmatprep.subr.bf16.mxu0 %v1478_v21  ;;  %vm568_vm10 = vcmask 191616   ;;  %vm644_vm13 = vcmask 191488  }
  0x2b   : > { %549 = vst [vmem:[#allocation2 + $0x10] sm:$0xf] %v548_v17  ;;  %588 = vrot.lane.b32.xlu1 %v586_v10, %s1477_s19  ;;  %1020 = vmatpush1.bf16.msra.mxu0 %v1382_v20  ;;  %vm1700_vm12 = vmand %vm568_vm10, %vm464_vm4  ;;  %v1387_v48 = vld [vmem:[%s1892_s4 + $0x10] sm:$0xff]   ;;  %vm699_vm14 = vcmask 1042432   ;;  %vm700_vm15 = vcmask 1046532   ;;  %v1388_v4 = vld [vmem:[%s1892_s4 + $0x8] sm:$0xff]  }
  0x2c   : > { %620 = vrot.lane.b32.xlu0 %v609_v12, %s1477_s19  ;;  %1021 = vmatprep.subr.bf16.mxu0 %v1478_v21  ;;  %v575_v25 = vld [vmem:[#allocation2 + $0x4] sm:$0x1]  ;;  %vm1735_vm0 = vmor %vm699_vm14, %vm700_vm15  ;;  %vm651_vm1 = vsmask.f32 3328  ;;  %vm652_vm2 = vsmask.f32 7440 }
  0x2d   : > { %v570_v27 = vld [vmem:[#allocation2] sm:$0xf]  ;;  %s1481_s16 = smov 120   ;;  %vm1758_vm3 = vmor %vm651_vm1, %vm652_vm2  ;;  %vm1015_vm4 = vcmask 1043456   ;;  %s1483_s21 = smov 40   ;;  %vm688_vm5 = vcmask 388288  }
  0x2e   : > { %vm716_vm6 = vcmask 585088   ;;  %vm729_vm7 = vcmask 781888   ;;  %vm800_vm8 = vcmask 1044416   ;;  %vm801_vm9 = vcmask 130052  }
  0x2f   : > { %590 = vrot.lane.b32.xlu1 %v587_v18, %s1477_s19  ;;  %1022 = vmatpush1.bf16.msra.mxu0 %v1383_v22  ;;  %v597_v47 = vld [vmem:[#allocation2 + $0x1c] sm:$0x1]  ;;  %vm795_vm10 = vcmask 982016   ;;  %vm857_vm14 = vcmask 519488   ;;  %vm882_vm15 = vcmask 716288  }
  0x30   : > { %624 = vrot.lane.b32.xlu0 %v617_v19, %s1477_s19  ;;  %1023 = vmatprep.subr.bf16.mxu0 %v1478_v21  ;;  %v630_v34 = vld [vmem:[#allocation2 + $0x8] sm:$0xf]  ;;  %v594_v40 = vld [vmem:[#allocation2 + $0x18] sm:$0xf] }
  0x31   : > { %v633_v41 = vld [vmem:[#allocation2 + $0xc] sm:$0x1]  ;;  %v639_v50 = vld [vmem:[#allocation2 + $0x14] sm:$0x1] }
  0x32   : > { %v636_v33 = vld [vmem:[#allocation2 + $0x10] sm:$0xf] }
  0x33   : > { %1024 = vmatpush1.bf16.msra.mxu0 %v1384_v23 }
  0x34   : > { %1025 = vmatprep.subr.bf16.mxu0 %v1478_v21 }
  0x37   : > { %1026 = vmatpush1.bf16.msra.mxu0 %v1385_v32 }
  0x38   : > { %1027 = vmatprep.subr.bf16.mxu0 %v1478_v21 }
  0x3b   : > { %1028 = vmatpush1.bf16.msra.mxu0 %v1386_v38 }
  0x3c   : > { %1029 = vmatprep.subr.bf16.mxu0 %v1478_v21 }
  0x3f   : > { %1030 = vmatpush1.bf16.msra.mxu0 %v1387_v48 }
  0x40   : > { %1031 = vmatprep.subr.bf16.mxu0 %v1478_v21 }
  0x43   : > { %1032 = vmatpush1.bf16.msra.mxu0 %v1388_v4 }
  0x44   : > { %1033 = vmatprep.subr.bf16.mxu0 %v1478_v21 }
  0x94   : > { %v565_v28 = vpop.permute.xlu1 %564  ;;  %v563_v30 = vpop.permute.xlu0 %562 }
  0x95   : > { %v576_v29 = vsel %vm1695_vm11, %v565_v28, %v575_v25  ;;  %v571_v31 = vsel %vm1700_vm12, %v563_v30, %v570_v27  ;;  %v1389_v27 = vld [vmem:[%s1892_s4] sm:$0xff]  }
  0x96   : > { %577 = vst [vmem:[#allocation2 + $0x4] sm:$0x1] %v576_v29  ;;  %572 = vst [vmem:[#allocation2] sm:$0xf] %v571_v31  ;;  %1034 = vmatpush1.bf16.msra.mxu0 %v1389_v27 }
  0x97   : > { %1039 = vmatprep.subr.bf16.mxu0 %v1478_v21 }
  0x99   : > { %v623_v35 = vpop.permute.xlu1 %622 }
  0x9a   : > { %v637_v36 = vsel %vm1700_vm12, %v623_v35, %v636_v33  ;;  %v619_v37 = vpop.permute.xlu0 %618 }
  0x9b   : > { %638 = vst [vmem:[#allocation2 + $0x10] sm:$0xf] %v637_v36  ;;  %v631_v39 = vsel %vm1700_vm12, %v619_v37, %v630_v34 }
  0x9c   : > { %632 = vst [vmem:[#allocation2 + $0x8] sm:$0xf] %v631_v39 }
  0x9d   : > { %v589_v42 = vpop.permute.xlu1 %588  ;;  %v647_v45 = vld [vmem:[#allocation2] sm:$0xf]  ;;  %v692_v54 = vld [vmem:[#allocation2 + $0x4] sm:$0x1] }
  0x9e   : > { %v595_v43 = vsel %vm1700_vm12, %v589_v42, %v594_v40  ;;  %v621_v44 = vpop.permute.xlu0 %620  ;;  %v642_v49 = vld [vmem:[#allocation2] sm:$0xf]  ;;  %v655_v51 = vshrl.u32 %v647_v45, 16  ;;  %v658_v55 = vshll.u32 %v647_v45, 16  ;;  %v704_v62 = vrot.slane %v692_v54, 5  ;;  %vm1807_vm12 = vmor %vm801_vm9, %vm800_vm8 }
  0x9f   : > { %596 = vst [vmem:[#allocation2 + $0x18] sm:$0xf] %v595_v43  ;;  %v634_v46 = vsel %vm1695_vm11, %v621_v44, %v633_v41  ;;  %645 = vst.msk [vmem:[#allocation3] sm:$0xf] %vm644_vm13, %v642_v49  ;;  %v691_v53 = vld [vmem:[#allocation2] sm:$0xe] }
  0xa0   : > { %635 = vst [vmem:[#allocation2 + $0xc] sm:$0x1] %v634_v46  ;;  %v1276_v61 = vrot.slane %v691_v53, 9  ;;  %v657_v63 = vrot.slane %v655_v51, 4  ;;  %v660_v3 = vrot.slane %v658_v55, 5 }
  0xa1   : > { %v591_v52 = vpop.permute.xlu1 %590  ;;  %v648_v10 = vld [vmem:[#allocation2 + $0x4] sm:$0x1] }
  0xa2   : > { %v598_v56 = vsel %vm1695_vm11, %v591_v52, %v597_v47  ;;  %v625_v57 = vpop.permute.xlu0 %624  ;;  %v806_v1 = vld [vmem:[#allocation2 + $0x10] sm:$0xf]  ;;  %v705_v16 = vsel %vm1735_vm0, %v1276_v61, %v704_v62  ;;  %v661_v25 = vor.u32 %v660_v3, %v657_v63  ;;  %v664_v33 = vshll.u32 %v648_v10, 16 }
  0xa3   : > { %599 = vst [vmem:[#allocation2 + $0x1c] sm:$0x1] %v598_v56  ;;  %v640_v58 = vsel %vm1695_vm11, %v625_v57, %v639_v50  ;;  %v719_v59 = vld [vmem:[#allocation2 + $0x8] sm:$0xf]  ;;  %v720_v13 = vld [vmem:[#allocation2 + $0x10] sm:$0xf] }
  0xa4   : > { %641 = vst [vmem:[#allocation2 + $0x14] sm:$0x1] %v640_v58  ;;  %723 = vrot.lane.b32.xlu0 %v719_v59, %s1479_s22  ;;  %v732_v0 = vld [vmem:[#allocation2 + $0x8] sm:$0xf]  ;;  %v819_v15 = vld [vmem:[#allocation2 + $0x10] sm:$0xf] }
  0xa5   : > { %v773_v2 = vld [vmem:[#allocation2 + $0x8] sm:$0xe]  ;;  %v737_v11 = vshrl.u32 %v732_v0, 16  ;;  %v740_v12 = vshll.u32 %v732_v0, 16  ;;  %v824_v34 = vshrl.u32 %v819_v15, 16  ;;  %v827_v39 = vshll.u32 %v819_v15, 16 }
  0xa6   : > { %v807_v5 = vld [vmem:[#allocation2 + $0x18] sm:$0xf]  ;;  %v693_v6 = vld [vmem:[#allocation2 + $0x8] sm:$0xe]  ;;  %v1278_v14 = vrot.slane %v773_v2, 9  ;;  %v662_v47 = vrot.slane %v661_v25, 4 }
  0xa7   : > { %v821_v7 = vld [vmem:[#allocation2 + $0x18] sm:$0xf]  ;;  %812 = vrot.lane.b32.xlu1 %v807_v5, %s1477_s19  ;;  %v774_v8 = vld [vmem:[#allocation2 + $0xc] sm:$0x1]  ;;  %v649_v20 = vld [vmem:[#allocation2 + $0x8] sm:$0xf] }
  0xa8   : > { %v694_v9 = vld [vmem:[#allocation2 + $0xc] sm:$0x1]  ;;  %810 = vrot.lane.b32.xlu0 %v806_v1, %s1477_s19  ;;  %v838_v18 = vshrl.u32 %v821_v7, 16  ;;  %v841_v19 = vshll.u32 %v821_v7, 16  ;;  %v783_v22 = vrot.slane %v774_v8, 5  ;;  %v1277_v23 = vrot.slane %v693_v6, 9 }
  0xa9   : > { %v733_v17 = vld [vmem:[#allocation2 + $0xc] sm:$0x1]  ;;  %v708_v24 = vrot.slane %v694_v9, 5  ;;  %v739_v29 = vrot.slane %v737_v11, 4  ;;  %v742_v30 = vrot.slane %v740_v12, 5  ;;  %s1480_s19 = smov 48  }
  0xaa   : > { %v822_v26 = vld [vmem:[#allocation2 + $0x1c] sm:$0x1]  ;;  %v840_v31 = vrot.slane %v838_v18, 4  ;;  %v843_v32 = vrot.slane %v841_v19, 5  ;;  %v669_v35 = vshrl.u32 %v649_v20, 16  ;;  %v672_v40 = vshll.u32 %v649_v20, 16 }
  0xab   : > { %725 = vrot.lane.b32.xlu1 %v720_v13, %s1479_s22  ;;  %v776_v28 = vld [vmem:[#allocation2 + $0x14] sm:$0x1]  ;;  %v775_v36 = vld [vmem:[#allocation2 + $0x10] sm:$0xe]  ;;  %v847_v38 = vshll.u32 %v822_v26, 16  ;;  %v709_v41 = vsel %vm1735_vm0, %v1277_v23, %v708_v24  ;;  %v746_v43 = vshll.u32 %v733_v17, 16  ;;  %v784_v46 = vsel %vm1735_vm0, %v1278_v14, %v783_v22 }
  0xac   : > { %710 = vrot.lane.b32.xlu0 %v705_v16, %s1480_s19  ;;  %v844_v37 = vor.u32 %v843_v32, %v840_v31  ;;  %v787_v42 = vrot.slane %v776_v28, 5  ;;  %v671_v44 = vrot.slane %v669_v35, 4  ;;  %v734_v45 = vld [vmem:[#allocation2 + $0x10] sm:$0xf]  ;;  %v743_v48 = vor.u32 %v742_v30, %v739_v29  ;;  %v650_v49 = vld [vmem:[#allocation2 + $0xc] sm:$0x1] }
  0xad   : > { %v674_v50 = vrot.slane %v672_v40, 5  ;;  %v666_v52 = vrot.slane %v664_v33, 5  ;;  %v1279_v53 = vrot.slane %v775_v36, 9  ;;  %v820_v54 = vld [vmem:[#allocation2 + $0x14] sm:$0x1]  ;;  %v751_v55 = vshrl.u32 %v734_v45, 16 }
  0xae   : > { %v754_v56 = vshll.u32 %v734_v45, 16  ;;  %v845_v57 = vrot.slane %v844_v37, 4  ;;  %v849_v58 = vrot.slane %v847_v38, 5  ;;  %v826_v59 = vrot.slane %v824_v34, 4  ;;  %v643_v62 = vld [vmem:[#allocation2 + $0x8] sm:$0xf] }
  0xaf   : > { %712 = vrot.lane.b32.xlu1 %v709_v41, %s1480_s19  ;;  %v829_v61 = vrot.slane %v827_v39, 5  ;;  %v788_v63 = vsel %vm1735_vm0, %v1279_v53, %v787_v42  ;;  %v748_v0 = vrot.slane %v746_v43, 5  ;;  %v675_v1 = vor.u32 %v674_v50, %v671_v44  ;;  %646 = vst.msk [vmem:[#allocation3 + $0x8] sm:$0xf] %vm644_vm13, %v643_v62  ;;  %v735_v6 = vld [vmem:[#allocation2 + $0x14] sm:$0x1] }
  0xb0   : > { %789 = vrot.lane.b32.xlu0 %v784_v46, %s1481_s16  ;;  %v678_v2 = vshll.u32 %v650_v49, 16  ;;  %v667_v3 = vsel %vm1758_vm3, %v662_v47, %v666_v52  ;;  %v744_v4 = vrot.slane %v743_v48, 4  ;;  %v833_v5 = vshll.u32 %v820_v54, 16  ;;  %v1390_v7 = vld [vmem:[%s1892_s4 + $0x68] ss:$0 sps:$4 sm:$0xff]   ;;  %s1484_s22 = smov 96  }
  0xb1   : > { %v753_v8 = vrot.slane %v751_v55, 4  ;;  %v756_v9 = vrot.slane %v754_v56, 5  ;;  %v850_v10 = vsel %vm1758_vm3, %v845_v57, %v849_v58  ;;  %v830_v11 = vor.u32 %v829_v61, %v826_v59  ;;  %v861_v18 = vld [vmem:[#allocation2 + $0x14] sm:$0x1]  ;;  %v1391_v20 = vld [vmem:[%s1892_s4 + $0x60] sm:$0xff]   ;;  %v1392_v30 = vld [vmem:[%s1892_s4 + $0x58] sm:$0xff]  }
  0xb2   : > { %v676_v12 = vrot.slane %v675_v1, 4  ;;  %v680_v13 = vrot.slane %v678_v2, 5  ;;  %v760_v14 = vshll.u32 %v735_v6, 16  ;;  %v749_v15 = vsel %vm1758_vm3, %v744_v4, %v748_v0  ;;  %v860_v24 = vld [vmem:[#allocation2 + $0x10] sm:$0xe]  ;;  %s1485_s19 = smov 64  }
  0xb3   : > { %791 = vrot.lane.b32.xlu1 %v788_v63, %s1481_s16  ;;  %v835_v16 = vrot.slane %v833_v5, 5  ;;  %v1017_v17 = vsel %vm1015_vm4, %v1390_v7, 0  ;;  %v757_v19 = vor.u32 %v756_v9, %v753_v8  ;;  %v831_v22 = vrot.slane %v830_v11, 4  ;;  %v863_v28 = vld [vmem:[#allocation2 + $0x1c] sm:$0x1]  ;;  %v1393_v37 = vld [vmem:[%s1892_s4 + $0x50] sm:$0xff]  }
  0xb4   : > { %682 = vrot.lane.b32.xlu0 %v667_v3, %s1482_s20  ;;  %1040 = vmatpush2.bf16.msra.mxu0 %v1017_v17  ;;  %v681_v23 = vsel %vm1758_vm3, %v676_v12, %v680_v13  ;;  %v762_v25 = vrot.slane %v760_v14, 5  ;;  %v870_v27 = vrot.slane %v861_v18, 5  ;;  %v1280_v31 = vrot.slane %v860_v24, 9  ;;  %v862_v32 = vld [vmem:[#allocation2 + $0x18] sm:$0xe]  ;;  %v1394_v39 = vld [vmem:[%s1892_s4 + $0x48] sm:$0xff]  }
  0xb5   : > { %1041 = vmatprep.subr.bf16.mxu0 %v1478_v21  ;;  %v836_v26 = vsel %vm1758_vm3, %v831_v22, %v835_v16  ;;  %v758_v29 = vrot.slane %v757_v19, 4  ;;  %v874_v34 = vrot.slane %v863_v28, 5  ;;  %v1281_v36 = vrot.slane %v862_v32, 9  ;;  %v1395_v40 = vld [vmem:[%s1892_s4 + $0x40] sm:$0xff]   ;;  %s396_s16 = sand.u32 1, %s1459_s25  }
  0xb6   : > { %v871_v35 = vsel %vm1735_vm0, %v1280_v31, %v870_v27  ;;  %vm770_vm11 = vcmask 978688   ;;  %vm816_vm13 = vcmask 322688   ;;  %v1282_v63 = vld [vmem:[%s1893_s5] ss:$0 sm:$0xff]  ;;  %s1843_s23 = scalar_lea.sflag [#allocation5], %s396_s16 }
  0xb7   : > { %853 = vrot.lane.b32.xlu1 %v850_v10, %s1483_s21  ;;  %v763_v33 = vsel %vm1758_vm3, %v758_v29, %v762_v25  ;;  %v875_v38 = vsel %vm1735_vm0, %v1281_v36, %v874_v34  ;;  %vm1011_vm0 = vcmask 719872   ;;  %v1309_v2 = vld [vmem:[%s1641_s18] sm:$0xff]   ;;  %s1263_s18 = sshll.u32 %s396_s16, 4  ;;  %vm1082_vm3 = vcmask 130048  }
  0xb8   : > { %764 = vrot.lane.b32.xlu0 %v749_v15, %s1484_s22  ;;  %1042 = vmatpush2.bf16.msra.mxu0 %v1391_v20  ;;  %v1310_v5 = vunpack.c.l.bf16 %v1309_v2  ;;  %v1311_v15 = vunpack.c.h.bf16 %v1309_v2  ;;  %s398_s17 = scalar_lea.vmem [#allocation4], %s1263_s18 }
  0xb9   : > { %1043 = vmatprep.subr.bf16.mxu0 %v1478_v21  ;;  %s1101_s15 = sshll.u32 %s398_s17, 4  ;;  %s1841_s15 = int_to_ptr.vmem [resolvable:$true] %s1101_s15 }
  0xba   : > { %s1399_s30 = scalar_lea.vmem %s1841_s15, 256 }
  0xbb   : > { %684 = vrot.lane.b32.xlu1 %v681_v23, %s1482_s20  ;;  %p1400_p13 = scmp.ne.s32.totalorder %s1841_s15, %s1399_s30 }
  0xbc   : > { %851 = vrot.lane.b32.xlu0 %v836_v26, %s1483_s21  ;;  %1044 = vmatpush2.bf16.msra.mxu0 %v1392_v30 }
  0xbd   : > { %1045 = vmatprep.subr.bf16.mxu0 %v1478_v21  ;;  %p1401_p0 = pnand %p1400_p13, %p1569_p4 }
  0xbf   : > { %766 = vrot.lane.b32.xlu1 %v763_v33, %s1484_s22  ;;  %p1402_p1 = pneg %p1401_p0 }
  0xc0   : > { %876 = vrot.lane.b32.xlu0 %v871_v35, %s1485_s19  ;;  %1046 = vmatpush2.bf16.msra.mxu0 %v1393_v37 }
  0xc1   : > { %1047 = vmatprep.subr.bf16.mxu0 %v1478_v21 }
  0xc3   : > { %878 = vrot.lane.b32.xlu1 %v875_v38, %s1485_s19  ;;  %s445_s19 = scalar_lea.vmem %s1894_s6, %s1631_s8  ;;  %s1307_s8 = sshll.u32 %s1467_s27, 8 }
  0xc4   : > { %1048 = vmatpush2.bf16.msra.mxu0 %v1394_v39  ;;  %v1313_v8 = vld [vmem:[%s445_s19] sm:$0xff]   ;;  %s1839_s22 = scalar_lea.hbm %s1895_s7, %s1307_s8  ;;  %s1486_s27 = smov [#allocation4]  }
  0xc5   : > { %1049 = vmatprep.subr.bf16.mxu0 %v1478_v21  ;;  %v1314_v14 = vunpack.c.l.bf16 %v1313_v8  ;;  %v1315_v22 = vunpack.c.h.bf16 %v1313_v8  ;;  %s1403_s10 = sshll.u32 %s1486_s27, 4  ;;  %s1404_s10 = int_to_ptr.vmem [resolvable:$false] %s1403_s10 }
  0xc6   : > { %s1405_s12 = scalar_lea.vmem %s1404_s10, 512  ;;  %p1406_p2 = scmp.lt.s32.totalorder %s1841_s15, %s1404_s10 }
  0xc7   : > { %p1407_p3 = scmp.lt.s32.totalorder %s1405_s12, %s1399_s30 }
  0xc8   : > { %1050 = vmatpush2.bf16.msra.mxu0 %v1395_v40 }
  0xc9   : > { %p1408_p5 = por %p1407_p3, %p1406_p2 }
  0xcb   : > { %p1409_p6 = pnand %p1408_p5, %p1402_p1 }
 0x116   : > { %v724_v41 = vpop.permute.xlu0 %723 }
 0x119   : > { %v813_v42 = vpop.permute.xlu1 %812 }
 0x11a   : > { %v811_v60 = vpop.permute.xlu0 %810 }
 0x11d   : > { %v726_v43 = vpop.permute.xlu1 %725 }
 0x11e   : > { %v711_v44 = vpop.permute.xlu0 %710 }
 0x121   : > { %v713_v45 = vpop.permute.xlu1 %712 }
 0x122   : > { %v790_v46 = vpop.permute.xlu0 %789 }
 0x123   : > { %v793_v49 = vrot.slane %v790_v46, 4 }
 0x125   : > { %v792_v47 = vpop.permute.xlu1 %791  ;;  %v796_v52 = vsel %vm795_vm10, %v793_v49, %v790_v46 }
 0x126   : > { %v683_v48 = vpop.permute.xlu0 %682  ;;  %v794_v54 = vrot.slane %v792_v47, 4 }
 0x127   : > { %689 = vst.msk [vmem:[#allocation3] sm:$0xf] %vm688_vm5, %v683_v48 }
 0x128   : > { %717 = vst.msk [vmem:[#allocation3] sm:$0xf] %vm716_vm6, %v711_v44  ;;  %v797_v57 = vsel %vm795_vm10, %v794_v54, %v792_v47 }
 0x129   : > { %730 = vst.msk [vmem:[#allocation3] sm:$0xf] %vm729_vm7, %v724_v41  ;;  %v854_v50 = vpop.permute.xlu1 %853 }
 0x12a   : > { %v765_v51 = vpop.permute.xlu0 %764 }
 0x12b   : > { %771 = vst.msk [vmem:[#allocation3] sm:$0xf] %vm770_vm11, %v765_v51 }
 0x12c   : > { %803 = vst.msk [vmem:[#allocation3] sm:$0xff] %vm1807_vm12, %v796_v52 }
 0x12d   : > { %817 = vst.msk [vmem:[#allocation3 + $0x4] sm:$0xf] %vm816_vm13, %v811_v60  ;;  %v685_v53 = vpop.permute.xlu1 %684 }
 0x12e   : > { %v852_v55 = vpop.permute.xlu0 %851  ;;  %690 = vst.msk [vmem:[#allocation3 + $0x8] sm:$0xf] %vm688_vm5, %v685_v53 }
 0x12f   : > { %858 = vst.msk [vmem:[#allocation3 + $0x4] sm:$0xf] %vm857_vm14, %v852_v55 }
 0x130   : > { %718 = vst.msk [vmem:[#allocation3 + $0x8] sm:$0xf] %vm716_vm6, %v713_v45 }
 0x131   : > { %731 = vst.msk [vmem:[#allocation3 + $0x8] sm:$0xf] %vm729_vm7, %v726_v43  ;;  %v767_v56 = vpop.permute.xlu1 %766 }
 0x132   : > { %v877_v58 = vpop.permute.xlu0 %876  ;;  %772 = vst.msk [vmem:[#allocation3 + $0x8] sm:$0xf] %vm770_vm11, %v767_v56 }
 0x133   : > { %883 = vst.msk [vmem:[#allocation3 + $0x4] sm:$0xf] %vm882_vm15, %v877_v58 }
 0x134   : > { %804 = vst.msk [vmem:[#allocation3 + $0x8] sm:$0xff] %vm1807_vm12, %v797_v57 }
 0x135   : > { %818 = vst.msk [vmem:[#allocation3 + $0xc] sm:$0xf] %vm816_vm13, %v813_v42  ;;  %v879_v59 = vpop.permute.xlu1 %878 }
 0x136   : > { %859 = vst.msk [vmem:[#allocation3 + $0xc] sm:$0xf] %vm857_vm14, %v854_v50 }
 0x137   : > { %884 = vst.msk [vmem:[#allocation3 + $0xc] sm:$0xf] %vm882_vm15, %v879_v59 }
 0x13b   : > { %v1396_v61 = vld [vmem:[#allocation3] ss:$8 sps:$4 sm:$0xff]  }
 0x13e   : > { %v1398_v62 = vld [vmem:[#allocation3 + $0x4] ss:$8 sps:$4 sm:$0xff]  }
 0x13f   : > { %1299 = vmatprep.mubr.msk.bf16.mxu0 %vm1011_vm0, %v1398_v62 }
 0x140   : > { %1052 = vmatmul.mubr.bf16.vlgmr.msra.gmra.mxu0 %v1396_v61 }
 0x200   : > { %v1053_v0 = vpop.f32.mrf.mxu0 }
 0x201   : > { %v1054_v1 = vadd.f32 %v1282_v63, %v1053_v0 }
 0x202   : > { %v1055_v3 = vpop.f32.mrf.mxu0 }
 0x203   : > { %vm1060_vm1 = vcmp.ge.f32.partialorder %v1054_v1, 0.0  ;;  %v1062_v4 = vmul.f32 0.2, %v1054_v1 }
 0x204   : > { %v1056_v6 = vpop.f32.mrf.mxu0 }
 0x205   : > { %v1064_v7 = vsel %vm1060_vm1, %v1054_v1, %v1062_v4  ;;  %v1057_v9 = vadd.f32 %v1282_v63, %v1056_v6 }
 0x206   : > { %v1066_v10 = vmul.f32 0.2, %v1064_v7  ;;  %v1058_v11 = vpop.f32.mrf.mxu0 }
 0x207   : > { %vm1061_vm2 = vcmp.ge.f32.partialorder %v1057_v9, 0.0  ;;  %v1063_v12 = vmul.f32 0.2, %v1057_v9 }
 0x208   : > { %v1072_v13 = vadd.f32 %v1310_v5, %v1066_v10 }
 0x209   : > { %v1065_v16 = vsel %vm1061_vm2, %v1057_v9, %v1063_v12 }
 0x20a   : > { %v1074_v17 = vmul.f32 0.2, %v1072_v13  ;;  %v1067_v18 = vmul.f32 0.2, %v1065_v16 }
 0x20c   : > { %v1080_v19 = vadd.f32 %v1314_v14, %v1074_v17  ;;  %v1073_v20 = vadd.f32 %v1311_v15, %v1067_v18 }
 0x20e   : > { %v1075_v23 = vmul.f32 0.2, %v1073_v20  ;;  %1083 = vst.msk [vmem:[%s398_s17] sm:$0xff] %vm1082_vm3, %v1080_v19 }
 0x210   : > { %v1081_v24 = vadd.f32 %v1315_v22, %v1075_v23 }
 0x212   : > { %1084 = vst.msk [vmem:[%s398_s17 + $0x8] sm:$0xff] %vm1082_vm3, %v1081_v24 }
 0x213   : > { %1412 = shalt.err (!%p1409_p6)
}
 0x214   : > { %s1413_s19 = scalar_lea.hbm %s1839_s22, 256  ;;  %s1417_s8 = scalar_lea.hbm %s1895_s7, 768 }
 0x215   : > { %p1414_p7 = scmp.ne.s32.totalorder %s1839_s22, %s1413_s19  ;;  %p1418_p11 = scmp.lt.s32.totalorder %s1839_s22, %s1895_s7 }
 0x216   : > { %p1419_p12 = scmp.lt.s32.totalorder %s1417_s8, %s1413_s19 }
 0x217   : > { %p1415_p9 = pnand %p1414_p7, %p1569_p4 }
 0x218   : > { %p1420_p13 = por %p1419_p12, %p1418_p11 }
 0x219   : > { %p1416_p10 = pneg %p1415_p9 }
 0x21b   : > { %p1421_p0 = pnand %p1420_p13, %p1416_p10 }
 0x21d   : > { %1424 = shalt.err (!%p1421_p0)
}
 0x21e   : > { %s1487_s21 = smov 128   ;;  %s1488_s30 = smov 8  }
 0x21f   : > { %1316 = dma.vmem_to_hbm [thread:$0]  (%p1569_p4), %s1841_s15, 256, %s1839_s22, %s1843_s23, %s1487_s21, %s1487_s21, %s1488_s30  }
 0x220 PF: > { %p1322_p1 = scmp.ge.s32.totalorder %s1475_s29, 2  ;;  %s1116_s27 = sand.u32 1, %s1455_s24  }
 0x221   : > { %s1117_s10 = scalar_lea.sflag [#allocation5], %s1116_s27 }
 0x222   : > { %p1319_p2 = pnand %p1322_p1, %p1576_p8 }
 0x224   : > { %p1320_p3 = pneg %p1319_p2 }
 0x226   : > { %1450 = dma.done.wait (%p1320_p3), %s1117_s10, 256  }
 0x227   : > { %1452 = vsyncadd (%p1320_p3), %s1117_s10, 4294967040  ;;  %s20_s29 = sadd.s32 1, %s1475_s29   ;;  %s1917_s24 = smov %s1459_s25 }
 0x228   : > { %p17_p5 = scmp.ge.s32.totalorder %s20_s29, 5   ;;  %s1918_s25 = smov %s1463_s26 }
 0x229   : > { %s1919_s26 = smov %s1582_s14  ;;  %s1920_s27 = smov %s1471_s28 }
 0x22a   : > { %s1921_s28 = smov %s1923_s9  ;;  %19 = sbr.rel (!%p17_p5) target bundleno = 4 (0x4), region = 100 }
 0x22f   :  { %1122 = vsyncpa [#allocation5], 1 }
 0x230   :  { %1124 = vsyncpa [#allocation5 + $0x1], 1 }

</bundles_post_ra>
